<compile_context>
chip_gen: v6e
topology: v6e:2x2x1
jax: 0.10.0
libtpu: 0.0.40
codegen_flags: <defaults>
</compile_context>

<pallas_src>
import functools

import jax
import jax.numpy as jnp
import numpy as np
from jax import lax
from jax.experimental import pallas as pl
from jax.experimental.pallas import tpu as pltpu

PI = 3.141592653589793


# ---------------------------------------------------------------------------
# per-query math (tiny (B, 2R) tensors -> computed in XLA, outside the kernel)
# ---------------------------------------------------------------------------
def _complex_mul(a, b):
    d = a.shape[-1] // 2
    a1, a2 = a[..., :d], a[..., d:]
    b1, b2 = b[..., :d], b[..., d:]
    return jnp.concatenate([a1 * b1 - a2 * b2, a1 * b2 + a2 * b1], axis=-1)


def _quat_calc(h, r):
    w_a, x_a, y_a, z_a = jnp.split(h, 4, axis=-1)
    w_b, x_b, y_b, z_b = jnp.split(r, 4, axis=-1)
    A = _complex_mul(w_a, w_b) - _complex_mul(x_a, x_b) - _complex_mul(y_a, y_b) - _complex_mul(z_a, z_b)
    B = _complex_mul(w_a, x_b) + _complex_mul(x_a, w_b) + _complex_mul(y_a, z_b) - _complex_mul(z_a, y_b)
    C = _complex_mul(w_a, y_b) - _complex_mul(x_a, z_b) + _complex_mul(y_a, w_b) + _complex_mul(z_a, x_b)
    D = _complex_mul(w_a, z_b) + _complex_mul(x_a, y_b) - _complex_mul(y_a, x_b) + _complex_mul(z_a, w_b)
    return jnp.concatenate([A, B, C, D], axis=-1)


def _get_norm(x, nums):
    chunks = jnp.split(x, nums, axis=-1)
    s = chunks[0] ** 2
    for c in chunks[1:]:
        s = s + c ** 2
    return jnp.sqrt(s)


def _queries_and_reg(lhs, rel, rhs, time, rank):
    """Mirrors TCompoundQ.forward up to (but not including) `res @ right.t()`."""
    two_r = 2 * rank
    rel0, rel1, theta = rel[:, :two_r], rel[:, two_r:2 * two_r], rel[:, 2 * two_r:]
    time0, time1 = time[:, :two_r], time[:, two_r:]

    full_rel = _quat_calc(rel0 + time0, time1)                 # (B, 2R)

    theta = theta * PI                                         # (B, R)
    cos = jnp.cos(theta)[:, :, None]
    sin = jnp.sin(theta)[:, :, None]
    l = lhs.reshape(lhs.shape[0], rank, 2)
    re, im = l[:, :, 0:1], l[:, :, 1:2]
    rot = (jnp.concatenate([cos * re, sin * re], axis=-1)
           + jnp.concatenate([-sin * im, cos * im], axis=-1))
    lhs_rot = rot.reshape(lhs.shape[0], two_r) + rel1          # (B, 2R)

    res = _quat_calc(lhs_rot, full_rel)                        # (B, 2R)
    reg = (_get_norm(lhs_rot, 8), _get_norm(full_rel, 8), _get_norm(rhs, 8))
    return res, reg


# ---------------------------------------------------------------------------
# Pallas kernel: one MXU dot per streamed entity-table tile
# ---------------------------------------------------------------------------
def _scores_tile_kernel(res_ref, right_ref, scores_ref):
    # (B, 2R) x (TILE_N, 2R)^T, f32 accumulation.  The cast happens only at the
    # store so a bf16 scores output halves the dominant HBM write stream.
    # (dot_general with (1,1) contraction == q @ k.T orientation; known-good
    #  MXU lowering without a per-tile transpose of the streamed operand.)
    scores_ref[...] = lax.dot_general(
        res_ref[...], right_ref[...],
        dimension_numbers=(((1,), (1,)), ((), ())),
        preferred_element_type=jnp.float32,
    ).astype(scores_ref.dtype)


# ---------------------------------------------------------------------------
# tiling heuristics
# ---------------------------------------------------------------------------
def _vmem_budget_bytes():
    try:
        physical = int(pltpu.get_tpu_info().vmem_capacity_bytes)
    except Exception:
        physical = 64 << 20          # assume the most constrained gen (v7x)
    # ~40% of physical VMEM for the two double-buffered big streams (table
    # tile + scores tile); the rest is headroom for the small `res` buffers,
    # semaphores and compiler temps.  Cap so v5e/v6e (128 MiB) do not pick
    # needlessly long per-step DMAs.
    return int(max(8 << 20, min(physical * 2 // 5, 48 << 20)))


def _pick_tile_n(n_entities, two_r, batch, table_isz, scores_isz, budget_bytes):
    # Pallas double-buffers both the streamed table tile and the scores tile.
    per_row = 2 * (two_r * table_isz + batch * scores_isz)
    t = max(128, (budget_bytes // per_row) // 128 * 128)
    return int(n_entities) if t >= n_entities else int(t)


# ---------------------------------------------------------------------------
# wrapper (gathers + per-query math + pallas_call)
# ---------------------------------------------------------------------------
@functools.partial(
    jax.jit, static_argnames=("rank", "tile_n", "scores_dtype", "vmem_budget_bytes"))
def tcompoundq_forward(x, emb_ent, emb_rel, emb_time, rank,
                       tile_n=None, scores_dtype=jnp.float32,
                       vmem_budget_bytes=None):
    """Returns (scores, [(reg_lhs, reg_rel, reg_rhs)], time_weights)."""
    two_r = 2 * rank
    B = x.shape[0]
    N = emb_ent.shape[0]

    # Embedding gathers (XLA).  Per-query tensors kept f32 so the quaternion /
    # rotation math runs on the f32 VPU path everywhere (v5e has no bf16 VALU).
    lhs = emb_ent[x[:, 0]].astype(jnp.float32)      # (B, 2R)
    rel = emb_rel[x[:, 1]].astype(jnp.float32)      # (B, 5R)
    rhs = emb_ent[x[:, 2]].astype(jnp.float32)      # (B, 2R)
    time = emb_time[x[:, 3]].astype(jnp.float32)    # (B, 4R)

    res, reg = _queries_and_reg(lhs, rel, rhs, time, rank)
    right = emb_ent                                  # streamed in native dtype (f32/bf16)
    res_mxu = res.astype(right.dtype)                # bf16 table -> bf16 MXU operands

    table_isz = jnp.dtype(right.dtype).itemsize
    scores_isz = jnp.dtype(scores_dtype).itemsize

    if tile_n is None:
        budget = vmem_budget_bytes if vmem_budget_bytes is not None else _vmem_budget_bytes()
        tile_n = _pick_tile_n(N, two_r, B, table_isz, scores_isz, budget)
    if tile_n >= N:
        tile_n = int(N)
    else:
        assert tile_n % 128 == 0, "tile_n must be a multiple of 128 (scores lane tiling)"
    n_tiles = pl.cdiv(N, tile_n)

    # Explicit scoped-VMEM limit: double buffers for the table tile and the
    # scores tile, two tiny buffers for res, plus headroom (>= 32 MiB floor is
    # safe on v5e/v6e/v7x; physical VMEM is 64-128 MiB).
    needed = (2 * tile_n * two_r * table_isz
              + 2 * B * tile_n * scores_isz
              + 2 * B * two_r * jnp.dtype(res_mxu.dtype).itemsize)
    vmem_limit = int(max(needed + (2 << 20), 32 << 20))

    cost = pl.CostEstimate(
        flops=2 * B * N * two_r,
        transcendentals=0,
        bytes_accessed=N * two_r * table_isz + B * N * scores_isz + B * two_r * table_isz)

    scores = pl.pallas_call(
        _scores_tile_kernel,
        out_shape=jax.ShapeDtypeStruct((B, N), scores_dtype),
        grid_spec=pltpu.PrefetchScalarGridSpec(
            num_scalar_prefetch=0,
            grid=(n_tiles,),
            in_specs=[
                pl.BlockSpec((B, two_r), lambda j: (0, 0)),        # res (constant tile)
                # Streamed entity-table tile.  If xprof still shows DMA waits
                # at tile boundaries, add pipeline_mode=pl.Buffered(3) here
                # (costs one extra tile of VMEM).
                pl.BlockSpec((tile_n, two_r), lambda j: (j, 0)),
            ],
            out_specs=pl.BlockSpec((B, tile_n), lambda j: (0, j)),  # lane-dense scores tile
        ),
        # Tiles are fully independent -> "parallel": v7x megacore splits the
        # entity-table stream across its two TensorCores.
        compiler_params=pltpu.CompilerParams(
            dimension_semantics=("parallel",),
            vmem_limit_bytes=vmem_limit),
        cost_estimate=cost,
    )(res_mxu, right)

    regularizer = [reg]
    # no_time_emb=False -> return the full time-embedding weight
    # (no_time_emb=True would return emb_time[:-1]).
    return scores, regularizer, emb_time


# ---------------------------------------------------------------------------
# independent pure-JAX reference for the per-query math (strided-slice
# formulation of the rotation, different from the wrapper's concat formulation)
# ---------------------------------------------------------------------------
def reference_queries(x, emb_ent, emb_rel, emb_time, rank):
    two_r = 2 * rank
    lhs = emb_ent[x[:, 0]].astype(jnp.float32)
    rel = emb_rel[x[:, 1]].astype(jnp.float32)
    rhs = emb_ent[x[:, 2]].astype(jnp.float32)
    time = emb_time[x[:, 3]].astype(jnp.float32)
    rel0, rel1, theta = rel[:, :two_r], rel[:, two_r:2 * two_r], rel[:, 2 * two_r:]
    time0, time1 = time[:, :two_r], time[:, two_r:]
    full_rel = _quat_calc(rel0 + time0, time1)
    theta = theta * PI
    cos, sin = jnp.cos(theta), jnp.sin(theta)
    re, im = lhs[:, 0::2], lhs[:, 1::2]
    rot_re = cos * re - sin * im
    rot_im = sin * re + cos * im
    lhs_rot = jnp.stack([rot_re, rot_im], axis=-1).reshape(lhs.shape[0], two_r) + rel1
    res = _quat_calc(lhs_rot, full_rel)
    return res, (_get_norm(lhs_rot, 8), _get_norm(full_rel, 8), _get_norm(rhs, 8))


# ---------------------------------------------------------------------------
if __name__ == "__main__":
    # small TCompoundQ config; sizes = (n_ent, n_rel, n_ent, n_ts)
    n_ent, n_rel, n_ts = 1024, 16, 32
    rank = 64                                  # 2R = 128 lanes
    init_size = 0.01
    B = 64
    TILE_N = 256                               # 4 grid steps over the entity table

    key = jax.random.PRNGKey(0)
    k_ent, k_rel, k_time, k_q = jax.random.split(key, 4)
    emb_ent = jax.random.normal(k_ent, (n_ent, 2 * rank), jnp.float32) * init_size
    emb_rel = jax.random.normal(k_rel, (n_rel, 5 * rank), jnp.float32) * init_size
    emb_time = jax.random.normal(k_time, (n_ts, 4 * rank), jnp.float32) * init_size

    kq0, kq1, kq2, kq3 = jax.random.split(k_q, 4)
    x = jnp.stack([
        jax.random.randint(kq0, (B,), 0, n_ent),
        jax.random.randint(kq1, (B,), 0, n_rel),
        jax.random.randint(kq2, (B,), 0, n_ent),
        jax.random.randint(kq3, (B,), 0, n_ts),
    ], axis=1).astype(jnp.int32)               # (B, 4) quadruples

    # ---- f32 entity table, explicit small tile (exercises multi-tile grid) --
    scores, regularizer, time_w = tcompoundq_forward(
        x, emb_ent, emb_rel, emb_time, rank, tile_n=TILE_N)
    jax.block_until_ready(scores)

    # golden: independent per-query reference + exact float64 matmul
    res_ref, (ref_rl, ref_rr, ref_rh) = reference_queries(x, emb_ent, emb_rel, emb_time, rank)
    golden = np.asarray(res_ref, np.float64) @ np.asarray(emb_ent, np.float64).T
    scale = float(np.max(np.abs(golden)))

    # per-query math (rotation / quaternion products / norms): same-precision
    # elementwise computation -> tight tolerance (catches interleave bugs).
    np.testing.assert_allclose(np.asarray(regularizer[0][0]), np.asarray(ref_rl),
                               rtol=1e-5, atol=1e-9)
    np.testing.assert_allclose(np.asarray(regularizer[0][1]), np.asarray(ref_rr),
                               rtol=1e-5, atol=1e-9)
    np.testing.assert_allclose(np.asarray(regularizer[0][2]), np.asarray(ref_rh),
                               rtol=1e-5, atol=1e-9)

    # scores: bound every entry's error relative to the overall score scale.
    # 1e-2*scale comfortably covers MXU input-rounding over K=2R while real
    # layout/math bugs produce O(scale) errors (the per-query math itself is
    # validated exactly above).
    sc = np.asarray(scores, np.float64)
    assert sc.shape == (B, n_ent) and np.all(np.isfinite(sc))
    np.testing.assert_allclose(sc, golden, rtol=0.0, atol=1e-2 * scale)
    assert time_w.shape == (n_ts, 4 * rank)

    # ---- auto-tiled path (VMEM-budget-derived tile_n) -----------------------
    scores_auto, _, _ = tcompoundq_forward(x, emb_ent, emb_rel, emb_time, rank)
    jax.block_until_ready(scores_auto)
    np.testing.assert_allclose(np.asarray(scores_auto, np.float64), golden,
                               rtol=0.0, atol=1e-2 * scale)

    # ---- bandwidth-optimized path: bf16 table + bf16 scores ----------------
    scores_bf16, reg_bf16, _ = tcompoundq_forward(
        x, emb_ent.astype(jnp.bfloat16), emb_rel, emb_time, rank,
        tile_n=TILE_N, scores_dtype=jnp.bfloat16)
    jax.block_until_ready(scores_bf16)
    sb = np.asarray(scores_bf16, np.float64)
    assert scores_bf16.dtype == jnp.bfloat16
    assert sb.shape == (B, n_ent) and np.all(np.isfinite(sb))
    # relative-to-scale tolerance: covers bf16 rounding of the gathered
    # embeddings, the streamed table and the bf16 score output.
    assert np.max(np.abs(sb - golden)) < 5e-2 * scale

    print("KERNEL_OK")
</pallas_src>

<mosaic_0001>
module attributes {stable_mosaic.version = 11 : i64} {
  func.func @_scores_tile_kernel(%arg0: i32, %arg1: memref<64x128xf32, #tpu.memory_space<vmem>>, %arg2: memref<256x128xf32, #tpu.memory_space<vmem>>, %arg3: memref<64x256xf32, #tpu.memory_space<vmem>>) attributes {dimension_semantics = [#tpu.dimension_semantics<parallel>], iteration_bounds = array<i64: 4>, scalar_prefetch = 0 : i64, scratch_operands = 0 : i64, tpu.core_type = #tpu.core_type<tc>, window_params = [{pipeline_mode = #tpu.pipeline_mode<synchronous>, transform_indices = @transform_0, window_bounds = array<i64: 64, 128>}, {transform_indices = @transform_1, window_bounds = array<i64: 256, 128>}, {transform_indices = @transform_2, window_bounds = array<i64: 64, 256>}]} {
    %c0 = arith.constant 0 : index
    %c0_0 = arith.constant 0 : index
    %0 = vector.load %arg1[%c0, %c0_0] : memref<64x128xf32, #tpu.memory_space<vmem>>, vector<64x128xf32>
    %c0_1 = arith.constant 0 : index
    %c0_2 = arith.constant 0 : index
    %1 = vector.load %arg2[%c0_1, %c0_2] : memref<256x128xf32, #tpu.memory_space<vmem>>, vector<256x128xf32>
    %cst = arith.constant dense<0.000000e+00> : vector<64x256xf32>
    %2 = tpu.matmul %0, %1, %cst {dimension_numbers = #tpu.dot_dimension_numbers<[1], [1], [0], [0], [0, 0, 1, 0], [], []>} : vector<64x128xf32>, vector<256x128xf32>, vector<64x256xf32> -> vector<64x256xf32>
    %c0_3 = arith.constant 0 : index
    %c0_4 = arith.constant 0 : index
    %3 = vector.load %arg3[%c0_3, %c0_4] : memref<64x256xf32, #tpu.memory_space<vmem>>, vector<64x256xf32>
    tpu.vector_store %arg3[%c0_3, %c0_4], %2 {strides = array<i32>} : memref<64x256xf32, #tpu.memory_space<vmem>>, vector<64x256xf32>,
    return
  }
  func.func @transform_0(%arg0: i32) -> (i32, i32) {
    %c0_i32 = arith.constant 0 : i32
    %c0_i32_0 = arith.constant 0 : i32
    %c0_i32_1 = arith.constant 0 : i32
    return %c0_i32, %c0_i32_0 : i32, i32
  }
  func.func @transform_1(%arg0: i32) -> (i32, i32) {
    %c0_i32 = arith.constant 0 : i32
    %c0_i32_0 = arith.constant 0 : i32
    return %arg0, %c0_i32 : i32, i32
  }
  func.func @transform_2(%arg0: i32) -> (i32, i32) {
    %c0_i32 = arith.constant 0 : i32
    %c0_i32_0 = arith.constant 0 : i32
    return %c0_i32, %arg0 : i32, i32
  }
}

</mosaic_0001>

<bundles_post_ra>
// kernel: tcompoundq_forward.1
= control target key start
LH: loop header
LB: loop body
LE: loop exit
PB: predicated region body
PF: predicated region fallthrough
CT: control target
= control target key end

     0   :  { %7 = vsyncpa [#allocation3], 0  ;;  %s796_s0 = inlined_call_operand.vmem [shape: f32[64,128], index: 0, kind: input, shape index: {}]   ;;  %s797_s1 = inlined_call_operand.vmem [shape: f32[1024,128], index: 1, kind: input, shape index: {}]   ;;  %s798_s2 = inlined_call_operand.hbm [shape: f32[64,1024], index: 2, kind: output, shape index: {}]  }
   0x1   :  { %9 = vsyncpa [#allocation3 + $0x1], 0  ;;  %s606_s9 = smov 0   ;;  %s608_s10 = smov 0  }
   0x2   :  { %s610_s11 = smov 0   ;;  %s612_s12 = smov 0  }
   0x3 LB: > { %s627_s13 = sadd.s32 4294967295, %s585_s12   ;;  %s390_s14 = sadd.s32 4294967294, %s585_s12   ;;  %s585_s12 = sphi %s612_s12, %s804_s12   ;;  %s581_s11 = sphi %s610_s11, %s803_s11   ;;  %s577_s10 = sphi %s608_s10, %s802_s10   ;;  %s573_s9 = sphi %s606_s9, %s801_s9  }
   0x4   : > { %s631_s15 = sadd.s32 1, %s585_s12   ;;  %s69_s16 = sadd.s32 1, %s581_s11 }
   0x5   : > { %s66_s17 = ssub.s32 %s585_s12, %s631_s15  ;;  %p79_p0 = scmp.ne.s32.totalorder %s581_s11, %s577_s10 }
   0x6   : > { %p67_p1 = scmp.eq.s32.totalorder %s66_s17, 0  ;;  %p80_p2 = scmp.eq.s32.totalorder %s627_s13, 3 }
   0x7   : > { %p85_p3 = scmp.ne.s32.totalorder %s577_s10, %s573_s9  ;;  %p86_p4 = scmp.eq.s32.totalorder %s390_s14, 3 }
   0x8   : > { %s642_s18 = scalar_select %p67_p1, %s581_s11, %s69_s16  }
   0x9   : > { %p644_p5 = por %p80_p2, %p79_p0  ;;  %p648_p6 = por %p86_p4, %p85_p3 }
   0xa   : > { %p393_p7 = scmp.ge.s32.totalorder %s585_s12, 1  ;;  %p116_p8 = scmp.lt.s32.totalorder %s585_s12, 5 }
   0xc   : > { %p117_p9 = pnand %p393_p7, %p116_p8 }
   0xd   : > { %s395_s21 = sshll.u32 (!%p117_p9), %s627_s13, 5  ;;  %s135_s23 = sand.u32 (!%p117_p9), 1, %s577_s10  }
   0xe   : > { %120 = sbr.rel (%p117_p9) target bundleno = 309 (0x135), region = 28  ;;  %p139_p10 = scmp.lt.s32.totalorder (!%p117_p9), %s395_s21, 127 }
   0xf   : > { %s394_s24 = sshll.u32 (!%p117_p9), %s135_s23, 7  ;;  %s587_s4 = smov (!%p117_p9), [#allocation2]  }
  0x10   : > { %s727_s25 = scalar_lea.vmem (!%p117_p9), [#allocation2], %s394_s24  ;;  %s529_s5 = sshll.u32 (!%p117_p9), %s587_s4, 4  ;;  %s530_s5 = int_to_ptr.vmem [resolvable:$false] %s529_s5 }
  0x11   : > { %s328_s27 = sshll.u32 (!%p117_p9), %s727_s25, 4  ;;  %s531_s6 = scalar_lea.vmem (!%p117_p9), %s530_s5, 4096  ;;  %s748_s27 = int_to_ptr.vmem [resolvable:$true] %s328_s27 }
  0x12   : > { %s525_s3 = scalar_lea.vmem (!%p117_p9), %s748_s27, 2048  ;;  %p532_p0 = scmp.lt.s32.totalorder (!%p117_p9), %s748_s27, %s530_s5 }
  0x13   : > { %v658_v0 = vld [vmem:[%s796_s0] sm:$0xff]  ;;  %s806_s21 = smov (!%p139_p10, %s395_s21), 127  ;;  %v146_v34 = vld [vmem:[%s796_s0 + $0x8] sm:$0xff]  ;;  %v147_v36 = vld [vmem:[%s796_s0 + $0x10] sm:$0xff]  ;;  %p526_p11 = scmp.ne.s32.totalorder %s748_s27, %s525_s3 }
  0x14   : > { %v663_v1 = vld [vmem:[%s796_s0 + $0x20] sm:$0xff]  ;;  %435 = vmatprep.mubr.f32.mxu0 %v658_v0  ;;  %s396_s26 = sshll.u32 %s806_s21, 3  ;;  %v150_v35 = vld [vmem:[%s796_s0 + $0x28] sm:$0xff]  ;;  %v151_v37 = vld [vmem:[%s796_s0 + $0x30] sm:$0xff]  ;;  %p533_p1 = scmp.lt.s32.totalorder %s531_s6, %s525_s3 }
  0x15   : > { %443 = vmatprep.mubr.f32.mxu1 %v663_v1  ;;  %s670_s29 = scalar_lea.vmem %s797_s1, %s396_s26  ;;  %v148_v38 = vld [vmem:[%s796_s0 + $0x18] sm:$0xff]  ;;  %s402_s26 = sshll.u32 %s627_s13, 8 }
  0x16   : > { %v184_v2 = vld [vmem:[%s670_s29 + $0xf8] sm:$0xff]  ;;  %v183_v4 = vld [vmem:[%s670_s29 + $0xf0] sm:$0xff]  ;;  %v182_v6 = vld [vmem:[%s670_s29 + $0xe8] sm:$0xff]  ;;  %s746_s30 = scalar_lea.hbm %s798_s2, %s402_s26  ;;  %s756_s13 = scalar_lea.sflag [#allocation3], %s135_s23 }
  0x17   : > { %v168_v3 = vld [vmem:[%s670_s29 + $0x78] sm:$0xff]  ;;  %403 = vmatprep.subr.mxu0 %v184_v2  ;;  %451 = vmatprep.subr.mxu1 %v184_v2  ;;  %v167_v5 = vld [vmem:[%s670_s29 + $0x70] sm:$0xff]  ;;  %v166_v7 = vld [vmem:[%s670_s29 + $0x68] sm:$0xff]  ;;  %p527_p12 = pnand %p526_p11, %p644_p5  ;;  %p534_p2 = por %p533_p1, %p532_p0 }
  0x18   : > { %404 = vmatpush3.xpose.msra.mxu0 %v168_v3  ;;  %467 = vmatpush3.xpose.msra.mxu1 %v168_v3  ;;  %v181_v8 = vld [vmem:[%s670_s29 + $0xe0] sm:$0xff]  ;;  %v180_v10 = vld [vmem:[%s670_s29 + $0xd8] sm:$0xff]  ;;  %v179_v12 = vld [vmem:[%s670_s29 + $0xd0] sm:$0xff] }
  0x19   : > { %405 = vmatprep.subr.mxu0 %v183_v4  ;;  %452 = vmatprep.subr.mxu1 %v183_v4  ;;  %v165_v9 = vld [vmem:[%s670_s29 + $0x60] sm:$0xff]  ;;  %v164_v11 = vld [vmem:[%s670_s29 + $0x58] sm:$0xff]  ;;  %v163_v13 = vld [vmem:[%s670_s29 + $0x50] sm:$0xff]  ;;  %p528_p13 = pneg %p527_p12 }
  0x1a   : > { %v178_v14 = vld [vmem:[%s670_s29 + $0xc8] sm:$0xff]  ;;  %v177_v16 = vld [vmem:[%s670_s29 + $0xc0] sm:$0xff]  ;;  %v176_v18 = vld [vmem:[%s670_s29 + $0xb8] sm:$0xff] }
  0x1b   : > { %v162_v15 = vld [vmem:[%s670_s29 + $0x48] sm:$0xff]  ;;  %v161_v17 = vld [vmem:[%s670_s29 + $0x40] sm:$0xff]  ;;  %v160_v19 = vld [vmem:[%s670_s29 + $0x38] sm:$0xff]  ;;  %p535_p3 = pnand %p534_p2, %p528_p13 }
  0x1c   : > { %406 = vmatpush3.xpose.msra.mxu0 %v167_v5  ;;  %468 = vmatpush3.xpose.msra.mxu1 %v167_v5  ;;  %v175_v20 = vld [vmem:[%s670_s29 + $0xb0] sm:$0xff]  ;;  %v174_v22 = vld [vmem:[%s670_s29 + $0xa8] sm:$0xff]  ;;  %v173_v24 = vld [vmem:[%s670_s29 + $0xa0] sm:$0xff] }
  0x1d   : > { %407 = vmatprep.subr.mxu0 %v182_v6  ;;  %453 = vmatprep.subr.mxu1 %v182_v6  ;;  %v159_v21 = vld [vmem:[%s670_s29 + $0x30] sm:$0xff]  ;;  %v158_v23 = vld [vmem:[%s670_s29 + $0x28] sm:$0xff]  ;;  %v157_v25 = vld [vmem:[%s670_s29 + $0x20] sm:$0xff] }
  0x1e   : > { %v172_v26 = vld [vmem:[%s670_s29 + $0x98] sm:$0xff]  ;;  %v171_v28 = vld [vmem:[%s670_s29 + $0x90] sm:$0xff]  ;;  %v170_v30 = vld [vmem:[%s670_s29 + $0x88] sm:$0xff] }
  0x1f   : > { %v156_v27 = vld [vmem:[%s670_s29 + $0x18] sm:$0xff]  ;;  %v155_v29 = vld [vmem:[%s670_s29 + $0x10] sm:$0xff]  ;;  %v154_v31 = vld [vmem:[%s670_s29 + $0x8] sm:$0xff] }
  0x20   : > { %408 = vmatpush3.xpose.msra.mxu0 %v166_v7  ;;  %469 = vmatpush3.xpose.msra.mxu1 %v166_v7  ;;  %v169_v32 = vld [vmem:[%s670_s29 + $0x80] sm:$0xff]  ;;  %v152_v39 = vld [vmem:[%s796_s0 + $0x38] sm:$0xff] }
  0x21   : > { %409 = vmatprep.subr.mxu0 %v181_v8  ;;  %454 = vmatprep.subr.mxu1 %v181_v8  ;;  %v153_v33 = vld [vmem:[%s670_s29] sm:$0xff] }
  0x24   : > { %410 = vmatpush3.xpose.msra.mxu0 %v165_v9  ;;  %470 = vmatpush3.xpose.msra.mxu1 %v165_v9 }
  0x25   : > { %411 = vmatprep.subr.mxu0 %v180_v10  ;;  %455 = vmatprep.subr.mxu1 %v180_v10 }
  0x28   : > { %412 = vmatpush3.xpose.msra.mxu0 %v164_v11  ;;  %471 = vmatpush3.xpose.msra.mxu1 %v164_v11 }
  0x29   : > { %413 = vmatprep.subr.mxu0 %v179_v12  ;;  %456 = vmatprep.subr.mxu1 %v179_v12 }
  0x2c   : > { %414 = vmatpush3.xpose.msra.mxu0 %v163_v13  ;;  %472 = vmatpush3.xpose.msra.mxu1 %v163_v13 }
  0x2d   : > { %415 = vmatprep.subr.mxu0 %v178_v14  ;;  %457 = vmatprep.subr.mxu1 %v178_v14 }
  0x30   : > { %416 = vmatpush3.xpose.msra.mxu0 %v162_v15  ;;  %473 = vmatpush3.xpose.msra.mxu1 %v162_v15 }
  0x31   : > { %417 = vmatprep.subr.mxu0 %v177_v16  ;;  %458 = vmatprep.subr.mxu1 %v177_v16 }
  0x34   : > { %418 = vmatpush3.xpose.msra.mxu0 %v161_v17  ;;  %474 = vmatpush3.xpose.msra.mxu1 %v161_v17 }
  0x35   : > { %419 = vmatprep.subr.mxu0 %v176_v18  ;;  %459 = vmatprep.subr.mxu1 %v176_v18 }
  0x38   : > { %420 = vmatpush3.xpose.msra.mxu0 %v160_v19  ;;  %475 = vmatpush3.xpose.msra.mxu1 %v160_v19 }
  0x39   : > { %421 = vmatprep.subr.mxu0 %v175_v20  ;;  %460 = vmatprep.subr.mxu1 %v175_v20 }
  0x3c   : > { %422 = vmatpush3.xpose.msra.mxu0 %v159_v21  ;;  %476 = vmatpush3.xpose.msra.mxu1 %v159_v21 }
  0x3d   : > { %423 = vmatprep.subr.mxu0 %v174_v22  ;;  %461 = vmatprep.subr.mxu1 %v174_v22 }
  0x40   : > { %424 = vmatpush3.xpose.msra.mxu0 %v158_v23  ;;  %477 = vmatpush3.xpose.msra.mxu1 %v158_v23 }
  0x41   : > { %425 = vmatprep.subr.mxu0 %v173_v24  ;;  %462 = vmatprep.subr.mxu1 %v173_v24 }
  0x44   : > { %426 = vmatpush3.xpose.msra.mxu0 %v157_v25  ;;  %478 = vmatpush3.xpose.msra.mxu1 %v157_v25 }
  0x45   : > { %427 = vmatprep.subr.mxu0 %v172_v26  ;;  %463 = vmatprep.subr.mxu1 %v172_v26 }
  0x48   : > { %428 = vmatpush3.xpose.msra.mxu0 %v156_v27  ;;  %479 = vmatpush3.xpose.msra.mxu1 %v156_v27 }
  0x49   : > { %429 = vmatprep.subr.mxu0 %v171_v28  ;;  %464 = vmatprep.subr.mxu1 %v171_v28 }
  0x4c   : > { %430 = vmatpush3.xpose.msra.mxu0 %v155_v29  ;;  %480 = vmatpush3.xpose.msra.mxu1 %v155_v29 }
  0x4d   : > { %431 = vmatprep.subr.mxu0 %v170_v30  ;;  %465 = vmatprep.subr.mxu1 %v170_v30 }
  0x50   : > { %432 = vmatpush3.xpose.msra.mxu0 %v154_v31  ;;  %481 = vmatpush3.xpose.msra.mxu1 %v154_v31 }
  0x51   : > { %433 = vmatprep.subr.mxu0 %v169_v32  ;;  %466 = vmatprep.subr.mxu1 %v169_v32 }
  0x54   : > { %434 = vmatpush3.xpose.msra.mxu0 %v153_v33  ;;  %482 = vmatpush3.xpose.msra.mxu1 %v153_v33 }
  0x57   : > { %436 = vmatmul.mubr.f32.vlgmr.msra.gmra.mxu0 %v658_v0  ;;  %444 = vmatmul.mubr.f32.vlgmr.msra.gmra.mxu1 %v663_v1 }
  0x58   : > { %437 = vmatprep.mubr.f32.mxu0 %v146_v34  ;;  %445 = vmatprep.mubr.f32.mxu1 %v150_v35 }
  0x5b   : > { %438 = vmatmul.mubr.f32.gmra.mxu0 %v146_v34  ;;  %446 = vmatmul.mubr.f32.gmra.mxu1 %v150_v35 }
  0x5c   : > { %439 = vmatprep.mubr.f32.mxu0 %v147_v36  ;;  %447 = vmatprep.mubr.f32.mxu1 %v151_v37 }
  0x5f   : > { %440 = vmatmul.mubr.f32.gmra.mxu0 %v147_v36  ;;  %448 = vmatmul.mubr.f32.gmra.mxu1 %v151_v37 }
  0x60   : > { %441 = vmatprep.mubr.f32.mxu0 %v148_v38  ;;  %449 = vmatprep.mubr.f32.mxu1 %v152_v39 }
  0x63   : > { %442 = vmatmul.mubr.f32.gmra.mxu0 %v148_v38  ;;  %450 = vmatmul.mubr.f32.gmra.mxu1 %v152_v39 }
 0x117   : > { %v251_v40 = vpop.f32.mrf.mxu0  ;;  %v275_v41 = vpop.f32.mrf.mxu1 }
 0x118   : > { %298 = vst [vmem:[%s727_s25] sm:$0xff] %v251_v40  ;;  %306 = vst [vmem:[%s727_s25 + $0x40] sm:$0xff] %v275_v41 }
 0x119   : > { %v253_v42 = vpop.f32.mrf.mxu0  ;;  %v277_v43 = vpop.f32.mrf.mxu1 }
 0x11a   : > { %299 = vst [vmem:[%s727_s25 + $0x8] sm:$0xff] %v253_v42  ;;  %307 = vst [vmem:[%s727_s25 + $0x48] sm:$0xff] %v277_v43 }
 0x11b   : > { %v257_v44 = vpop.f32.mrf.mxu0  ;;  %v281_v45 = vpop.f32.mrf.mxu1 }
 0x11c   : > { %300 = vst [vmem:[%s727_s25 + $0x10] sm:$0xff] %v257_v44  ;;  %308 = vst [vmem:[%s727_s25 + $0x50] sm:$0xff] %v281_v45 }
 0x11d   : > { %v259_v46 = vpop.f32.mrf.mxu0  ;;  %v283_v47 = vpop.f32.mrf.mxu1 }
 0x11e   : > { %301 = vst [vmem:[%s727_s25 + $0x18] sm:$0xff] %v259_v46  ;;  %309 = vst [vmem:[%s727_s25 + $0x58] sm:$0xff] %v283_v47 }
 0x11f   : > { %v263_v48 = vpop.f32.mrf.mxu0  ;;  %v287_v49 = vpop.f32.mrf.mxu1 }
 0x120   : > { %302 = vst [vmem:[%s727_s25 + $0x20] sm:$0xff] %v263_v48  ;;  %310 = vst [vmem:[%s727_s25 + $0x60] sm:$0xff] %v287_v49 }
 0x121   : > { %v265_v50 = vpop.f32.mrf.mxu0  ;;  %v289_v51 = vpop.f32.mrf.mxu1 }
 0x122   : > { %303 = vst [vmem:[%s727_s25 + $0x28] sm:$0xff] %v265_v50  ;;  %311 = vst [vmem:[%s727_s25 + $0x68] sm:$0xff] %v289_v51 }
 0x123   : > { %v269_v52 = vpop.f32.mrf.mxu0  ;;  %v293_v53 = vpop.f32.mrf.mxu1 }
 0x124   : > { %304 = vst [vmem:[%s727_s25 + $0x30] sm:$0xff] %v269_v52  ;;  %312 = vst [vmem:[%s727_s25 + $0x70] sm:$0xff] %v293_v53 }
 0x125   : > { %v271_v54 = vpop.f32.mrf.mxu0  ;;  %v295_v55 = vpop.f32.mrf.mxu1 }
 0x126   : > { %305 = vst [vmem:[%s727_s25 + $0x38] sm:$0xff] %v271_v54  ;;  %313 = vst [vmem:[%s727_s25 + $0x78] sm:$0xff] %v295_v55 }
 0x127   : > { %538 = shalt.err (!%p535_p3)
}
 0x128   : > { %s539_s7 = scalar_lea.hbm %s746_s30, 2048  ;;  %s543_s16 = scalar_lea.hbm %s798_s2, 8192 }
 0x129   : > { %p540_p4 = scmp.ne.s32.totalorder %s746_s30, %s539_s7  ;;  %p544_p9 = scmp.lt.s32.totalorder %s746_s30, %s798_s2 }
 0x12a   : > { %p545_p10 = scmp.lt.s32.totalorder %s543_s16, %s539_s7 }
 0x12b   : > { %p541_p7 = pnand %p540_p4, %p644_p5 }
 0x12c   : > { %p546_p11 = por %p545_p10, %p544_p9 }
 0x12d   : > { %p542_p8 = pneg %p541_p7 }
 0x12f   : > { %p547_p12 = pnand %p546_p11, %p542_p8 }
 0x131   : > { %550 = shalt.err (!%p547_p12)
}
 0x132   : > { %s588_s22 = smov 256   ;;  %s589_s23 = smov 1024  }
 0x133   : > { %s590_s24 = smov 16  }
 0x134   : > { %483 = dma.vmem_to_hbm [thread:$0]  (%p644_p5), %s748_s27, 2048, %s746_s30, %s756_s13, %s588_s22, %s589_s23, %s590_s24  }
 0x135 PF: > { %p489_p13 = scmp.ge.s32.totalorder %s585_s12, 2  ;;  %s343_s25 = sand.u32 1, %s573_s9  }
 0x136   : > { %s344_s26 = scalar_lea.sflag [#allocation3], %s343_s25 }
 0x137   : > { %p486_p0 = pnand %p489_p13, %p648_p6 }
 0x139   : > { %p487_p1 = pneg %p486_p0 }
 0x13b   : > { %568 = dma.done.wait (%p487_p1), %s344_s26, 2048  }
 0x13c   : > { %570 = vsyncadd (%p487_p1), %s344_s26, 4294965248  ;;  %p12_p2 = scmp.ge.s32.totalorder %s631_s15, 6   ;;  %s801_s9 = smov %s577_s10 }
 0x13d   : > { %s802_s10 = smov %s581_s11  ;;  %s803_s11 = smov %s642_s18 }
 0x13e   : > { %s804_s12 = smov %s631_s15  ;;  %14 = sbr.rel (!%p12_p2) target bundleno = 3 (0x3), region = 63 }
 0x143   :  { %349 = vsyncpa [#allocation3], 1 }
 0x144   :  { %351 = vsyncpa [#allocation3 + $0x1], 1 }

</bundles_post_ra>
